<compile_context>
chip_gen: v5e
topology: v5e:2x2
jax: 0.10.0
libtpu: 0.0.40
codegen_flags: <defaults>
</compile_context>

<pallas_src>
import functools

import jax
import jax.numpy as jnp
from jax.experimental import pallas as pl
from jax.experimental.pallas import tpu as pltpu


def _pick_tile(dim, cap, align):
    """Largest t <= cap with t % align == 0 and dim % t == 0; else full dim."""
    if dim <= cap:
        return dim
    t = (cap // align) * align
    while t >= align:
        if dim % t == 0:
            return t
        t -= align
    return dim  # fall back to a single full-dim block


# ---------------------------------------------------------------------------
# Tiled bf16 matmul kernels with fused activation (MXU hot path)
# ---------------------------------------------------------------------------
def _matmul_act_single_kernel(a_ref, b_ref, o_ref, *, act):
    # Single K-step: no accumulator scratch, no phase predicates.
    acc = jnp.dot(a_ref[...], b_ref[...], preferred_element_type=jnp.float32)
    if act == "lrelu":
        acc = jnp.where(acc >= 0, acc, 0.2 * acc)
    o_ref[...] = acc.astype(o_ref.dtype)


def _matmul_act_multi_kernel(a_ref, b_ref, o_ref, acc_ref, *, act):
    k = pl.program_id(2)

    @pl.when(k == 0)
    def _():
        acc_ref[...] = jnp.zeros_like(acc_ref)

    acc_ref[...] += jnp.dot(a_ref[...], b_ref[...],
                            preferred_element_type=jnp.float32)

    @pl.when(k == pl.num_programs(2) - 1)
    def _():
        acc = acc_ref[...]
        if act == "lrelu":
            acc = jnp.where(acc >= 0, acc, 0.2 * acc)
        o_ref[...] = acc.astype(o_ref.dtype)


def matmul_act(a_bf16, b_bf16, act="none", out_dtype=jnp.bfloat16):
    """C = act(A @ B); A:(M,K) bf16, B:(K,N) bf16, f32 accumulation."""
    M, K = a_bf16.shape
    K2, N = b_bf16.shape
    assert K == K2

    # tm/tn <= 256 keeps >=2 blocks on a parallel axis per layer (feeds both
    # v7x TensorCores); tk <= 6400 keeps double-buffered A+B inside v5e's
    # 16 MiB default scoped VMEM while giving 1-2 K steps per layer.
    tm = _pick_tile(M, 256, 8)
    tn = _pick_tile(N, 256, 128)
    tk = _pick_tile(K, 6400, 128)
    ksteps = K // tk

    if ksteps == 1:
        return pl.pallas_call(
            functools.partial(_matmul_act_single_kernel, act=act),
            out_shape=jax.ShapeDtypeStruct((M, N), out_dtype),
            grid_spec=pltpu.PrefetchScalarGridSpec(
                num_scalar_prefetch=0,
                grid=(M // tm, N // tn),
                in_specs=[
                    pl.BlockSpec((tm, K), lambda i, j: (i, 0)),
                    pl.BlockSpec((K, tn), lambda i, j: (0, j)),
                ],
                out_specs=pl.BlockSpec((tm, tn), lambda i, j: (i, j)),
            ),
            compiler_params=pltpu.CompilerParams(
                dimension_semantics=("parallel", "parallel")),
        )(a_bf16, b_bf16)

    return pl.pallas_call(
        functools.partial(_matmul_act_multi_kernel, act=act),
        out_shape=jax.ShapeDtypeStruct((M, N), out_dtype),
        grid_spec=pltpu.PrefetchScalarGridSpec(
            num_scalar_prefetch=0,
            grid=(M // tm, N // tn, ksteps),
            in_specs=[
                pl.BlockSpec((tm, tk), lambda i, j, k: (i, k)),
                pl.BlockSpec((tk, tn), lambda i, j, k: (k, j)),
            ],
            out_specs=pl.BlockSpec((tm, tn), lambda i, j, k: (i, j)),
            scratch_shapes=[pltpu.VMEM((tm, tn), jnp.float32)],
        ),
        compiler_params=pltpu.CompilerParams(
            dimension_semantics=("parallel", "parallel", "arbitrary")),
    )(a_bf16, b_bf16)


# ---------------------------------------------------------------------------
# Cout=1 conv head: single-step VPU multiply + lane reduce + fused sigmoid
# ---------------------------------------------------------------------------
def _matvec_sigmoid_kernel(a_ref, b_ref, o_ref):
    a = a_ref[...].astype(jnp.float32)          # (M, K)
    b = b_ref[...].astype(jnp.float32)          # (1, K)
    acc = jnp.sum(a * b, axis=-1, keepdims=True)
    o_ref[...] = jax.nn.sigmoid(acc).astype(o_ref.dtype)


def matvec_sigmoid(a_bf16, b_row_bf16):
    """out = sigmoid(A @ b^T); A:(M,K) bf16, b:(1,K) bf16 -> (M,1) f32."""
    M, K = a_bf16.shape
    return pl.pallas_call(
        _matvec_sigmoid_kernel,
        out_shape=jax.ShapeDtypeStruct((M, 1), jnp.float32),
        grid_spec=pltpu.PrefetchScalarGridSpec(
            num_scalar_prefetch=0,
            grid=(1,),
            in_specs=[
                pl.BlockSpec((M, K), lambda i: (0, 0)),
                pl.BlockSpec((1, K), lambda i: (0, 0)),
            ],
            out_specs=pl.BlockSpec((M, 1), lambda i: (0, 0)),
        ),
        compiler_params=pltpu.CompilerParams(
            dimension_semantics=("arbitrary",)),
    )(a_bf16, b_row_bf16)


# ---------------------------------------------------------------------------
# BatchNorm (train-mode batch stats) + LeakyReLU(0.2), R-blocked (scalable)
#   pass 1: per-channel sum / sumsq reduced over R-blocks -> scale, shift
#   pass 2: y = x*scale + shift, LeakyReLU, bf16 out
# ---------------------------------------------------------------------------
def _bn_stats_kernel(x_ref, g_ref, b_ref, scale_ref, shift_ref,
                     sum_ref, ssq_ref, *, r_total):
    r = pl.program_id(1)

    @pl.when(r == 0)
    def _():
        sum_ref[...] = jnp.zeros_like(sum_ref)
        ssq_ref[...] = jnp.zeros_like(ssq_ref)

    x = x_ref[...].astype(jnp.float32)
    sum_ref[...] += jnp.sum(x, axis=0, keepdims=True)
    ssq_ref[...] += jnp.sum(x * x, axis=0, keepdims=True)

    @pl.when(r == pl.num_programs(1) - 1)
    def _():
        inv_r = 1.0 / r_total
        mean = sum_ref[...] * inv_r
        var = ssq_ref[...] * inv_r - mean * mean   # biased (train-mode BN)
        scale = g_ref[...] * jax.lax.rsqrt(var + 1e-5)
        scale_ref[...] = scale
        shift_ref[...] = b_ref[...] - mean * scale


def _bn_apply_lrelu_kernel(x_ref, scale_ref, shift_ref, o_ref):
    x = x_ref[...].astype(jnp.float32)
    y = x * scale_ref[...] + shift_ref[...]
    o_ref[...] = jnp.where(y >= 0, y, 0.2 * y).astype(o_ref.dtype)


def bn_lrelu(x2d_bf16, gamma, beta):
    """x2d: (R, C) bf16 with R = N*H*W -> (R, C) bf16."""
    R, C = x2d_bf16.shape
    tc = _pick_tile(C, 256, 128)
    tr = _pick_tile(R, 1024, 8)
    g = gamma.reshape(1, C).astype(jnp.float32)
    b = beta.reshape(1, C).astype(jnp.float32)

    scale, shift = pl.pallas_call(
        functools.partial(_bn_stats_kernel, r_total=float(R)),
        out_shape=(jax.ShapeDtypeStruct((1, C), jnp.float32),
                   jax.ShapeDtypeStruct((1, C), jnp.float32)),
        grid_spec=pltpu.PrefetchScalarGridSpec(
            num_scalar_prefetch=0,
            grid=(C // tc, R // tr),
            in_specs=[
                pl.BlockSpec((tr, tc), lambda c, r: (r, c)),
                pl.BlockSpec((1, tc), lambda c, r: (0, c)),
                pl.BlockSpec((1, tc), lambda c, r: (0, c)),
            ],
            out_specs=[pl.BlockSpec((1, tc), lambda c, r: (0, c)),
                       pl.BlockSpec((1, tc), lambda c, r: (0, c))],
            scratch_shapes=[pltpu.VMEM((1, tc), jnp.float32),
                            pltpu.VMEM((1, tc), jnp.float32)],
        ),
        compiler_params=pltpu.CompilerParams(
            dimension_semantics=("parallel", "arbitrary")),
    )(x2d_bf16, g, b)

    return pl.pallas_call(
        _bn_apply_lrelu_kernel,
        out_shape=jax.ShapeDtypeStruct((R, C), jnp.bfloat16),
        grid_spec=pltpu.PrefetchScalarGridSpec(
            num_scalar_prefetch=0,
            grid=(R // tr, C // tc),
            in_specs=[
                pl.BlockSpec((tr, tc), lambda r, c: (r, c)),
                pl.BlockSpec((1, tc), lambda r, c: (0, c)),
                pl.BlockSpec((1, tc), lambda r, c: (0, c)),
            ],
            out_specs=pl.BlockSpec((tr, tc), lambda r, c: (r, c)),
        ),
        compiler_params=pltpu.CompilerParams(
            dimension_semantics=("parallel", "parallel")),
    )(x2d_bf16, scale, shift)


# ---------------------------------------------------------------------------
# Conv via im2col (bf16 patch gather as XLA glue) + Pallas matmul
# TODO(synk): fuse the im2col gather into the matmul kernel: fold the 25
# (kh,kw) taps into the K grid axis and read contiguous windows of a
# stride-phased (space-to-depth) copy of the padded NHWC activation via the
# A BlockSpec index_map / manual make_async_copy, so the 25x patch expansion
# never touches HBM. Kept materialized here to stay lowering-safe.
# ---------------------------------------------------------------------------
def _im2col(x_nhwc, k, stride, pad, k_cols):
    """NHWC -> bf16 patches (N*OH*OW, k_cols), (kh,kw,c) flattening order."""
    x = jnp.pad(x_nhwc.astype(jnp.bfloat16),
                ((0, 0), (pad, pad), (pad, pad), (0, 0)))
    N, Hp, Wp, C = x.shape
    OH = (Hp - k) // stride + 1
    OW = (Wp - k) // stride + 1
    cols = []
    for di in range(k):
        for dj in range(k):
            cols.append(x[:, di:di + stride * OH:stride,
                          dj:dj + stride * OW:stride, :])
    patches = jnp.stack(cols, axis=3).reshape(N * OH * OW, k * k * C)
    if k_cols > k * k * C:   # zero-pad K (only conv1: 75 -> 128)
        patches = jnp.pad(patches, ((0, 0), (0, k_cols - k * k * C)))
    return patches, (N, OH, OW)


def conv2d_pallas(x_nhwc, w2d_bf16, k, cout, stride, pad, act="none"):
    """w2d_bf16: (K_padded, Cout) bf16 (pre-reshaped / pre-cast). NHWC bf16 out."""
    patches, (N, OH, OW) = _im2col(x_nhwc, k, stride, pad, w2d_bf16.shape[0])
    out = matmul_act(patches, w2d_bf16, act=act, out_dtype=jnp.bfloat16)
    return out.reshape(N, OH, OW, cout)


# ---------------------------------------------------------------------------
# Parameters
# ---------------------------------------------------------------------------
_SPECS = [
    # (cin, cout, k, stride, pad)
    (None, 128, 5, 2, 2),
    (128, 256, 5, 2, 2),
    (256, 512, 5, 2, 2),
    (512, 1024, 5, 2, 2),
    (1024, 1, 5, 4, 1),
]


def init_params(in_channels=3, key=jax.random.PRNGKey(0)):
    # Weights are stored as (kH, kW, Cin, Cout); a real PyTorch checkpoint
    # (Cout, Cin, kH, kW) would need transpose(2, 3, 1, 0) before this.
    params = {"conv": [], "gamma": [], "beta": []}
    keys = jax.random.split(key, len(_SPECS))
    cin_prev = in_channels
    for (cin, cout, k, _, _), kk in zip(_SPECS, keys):
        cin = cin_prev if cin is None else cin
        w = jax.random.normal(kk, (k, k, cin, cout), jnp.float32) * 0.05
        params["conv"].append(w)
        cin_prev = cout
    for cfeat in (256, 512, 1024):
        params["gamma"].append(jnp.ones((cfeat,), jnp.float32))
        params["beta"].append(jnp.zeros((cfeat,), jnp.float32))
    return params


def prepare_params(params):
    """One-time: reshape conv weights to 2D matmul form, pad K, cast to bf16."""
    # TODO(synk): per-generation int8 weight quantization (with per-Cout scales
    # in the matmul epilogue) for conv3/conv4 on v5e/v6e; v7x MXU has no int
    # path so it must stay bf16 (or fp8) there.
    prepared = {"w2d": [], "gamma": params["gamma"], "beta": params["beta"]}
    for w in params["conv"]:
        k, _, cin, cout = w.shape
        kk = k * k * cin
        w2d = w.reshape(kk, cout).astype(jnp.bfloat16)
        if kk % 128 != 0:   # conv1: pad K 75 -> 128 (zeros contribute nothing)
            w2d = jnp.pad(w2d, ((0, 128 - kk % 128), (0, 0)))
        prepared["w2d"].append(w2d)
    # last layer (Cout=1): store as a (1, K) row for the VPU reduction kernel
    prepared["w_row_last"] = prepared["w2d"][-1].T  # (1, 25600) bf16
    return prepared


# ---------------------------------------------------------------------------
# Full discriminator forward
# ---------------------------------------------------------------------------
def discriminator_forward(x_nchw, prepared):
    # accept NCHW (PyTorch convention); compute in NHWC, bf16 between layers
    x = jnp.transpose(x_nchw, (0, 2, 3, 1)).astype(jnp.bfloat16)

    # conv1 + LeakyReLU fused into the matmul epilogue (bf16 out)
    _, cout, k, s, p = _SPECS[0]
    x = conv2d_pallas(x, prepared["w2d"][0], k, cout, s, p, act="lrelu")

    # conv2..4 : conv (MXU kernel) then two-pass BN + LeakyReLU kernels
    for li in range(3):
        _, cout, k, s, p = _SPECS[li + 1]
        x = conv2d_pallas(x, prepared["w2d"][li + 1], k, cout, s, p, act="none")
        N, H, W, C = x.shape
        x2d = bn_lrelu(x.reshape(N * H * W, C),
                       prepared["gamma"][li], prepared["beta"][li])
        x = x2d.reshape(N, H, W, C)

    # conv5 (Cout=1) + Sigmoid: single-step VPU reduction, no MXU N-padding
    _, _, k, s, p = _SPECS[4]
    patches, (N, _, _) = _im2col(x, k, s, p, prepared["w_row_last"].shape[1])
    out = matvec_sigmoid(patches, prepared["w_row_last"])  # (N, 1) f32
    return out.reshape(N, 1)


if __name__ == "__main__":
    key = jax.random.PRNGKey(0)
    k_in, k_par = jax.random.split(key)

    B, C, H, W = 2, 3, 64, 64   # module spec: BxCx64x64 -> Bx1
    x = jax.random.normal(k_in, (B, C, H, W), jnp.float32)

    params = init_params(in_channels=C, key=k_par)
    prepared = prepare_params(params)

    out = discriminator_forward(x, prepared)
    out = jax.block_until_ready(out)

    assert out.shape == (B, 1), out.shape
    assert bool(jnp.all(jnp.isfinite(out)))
    assert bool(jnp.all((out >= 0.0) & (out <= 1.0)))  # sigmoid output range
    print("KERNEL_OK")
</pallas_src>

<mosaic_0001>
module attributes {stable_mosaic.version = 11 : i64} {
  func.func @_matmul_act_single_kernel(%arg0: i32, %arg1: i32, %arg2: memref<256x128xbf16, #tpu.memory_space<vmem>>, %arg3: memref<128x128xbf16, #tpu.memory_space<vmem>>, %arg4: memref<256x128xbf16, #tpu.memory_space<vmem>>) attributes {dimension_semantics = [#tpu.dimension_semantics<parallel>, #tpu.dimension_semantics<parallel>], iteration_bounds = array<i64: 8, 1>, scalar_prefetch = 0 : i64, scratch_operands = 0 : i64, tpu.core_type = #tpu.core_type<tc>, window_params = [{transform_indices = @transform_0, window_bounds = array<i64: 256, 128>}, {transform_indices = @transform_1, window_bounds = array<i64: 128, 128>}, {transform_indices = @transform_2, window_bounds = array<i64: 256, 128>}]} {
    %c0 = arith.constant 0 : index
    %c0_0 = arith.constant 0 : index
    %0 = vector.load %arg2[%c0, %c0_0] : memref<256x128xbf16, #tpu.memory_space<vmem>>, vector<256x128xbf16>
    %c0_1 = arith.constant 0 : index
    %c0_2 = arith.constant 0 : index
    %1 = vector.load %arg3[%c0_1, %c0_2] : memref<128x128xbf16, #tpu.memory_space<vmem>>, vector<128x128xbf16>
    %cst = arith.constant dense<0.000000e+00> : vector<256x128xf32>
    %2 = tpu.matmul %0, %1, %cst {dimension_numbers = #tpu.dot_dimension_numbers<[1], [0], [0], [1], [0, 0, 1, 1], [], []>} : vector<256x128xbf16>, vector<128x128xbf16>, vector<256x128xf32> -> vector<256x128xf32>
    %cst_3 = arith.constant 0.000000e+00 : f32
    %3 = vector.broadcast %cst_3 : f32 to vector<256x128xf32>
    %4 = arith.cmpf oge, %2, %3 : vector<256x128xf32>
    %cst_4 = arith.constant 2.000000e-01 : f32
    %5 = vector.broadcast %cst_4 : f32 to vector<256x128xf32>
    %6 = arith.mulf %5, %2 : vector<256x128xf32>
    %7 = arith.select %4, %2, %6 : vector<256x128xi1>, vector<256x128xf32>
    %8 = arith.truncf %7 : vector<256x128xf32> to vector<256x128xbf16>
    %c0_5 = arith.constant 0 : index
    %c0_6 = arith.constant 0 : index
    %9 = vector.load %arg4[%c0_5, %c0_6] : memref<256x128xbf16, #tpu.memory_space<vmem>>, vector<256x128xbf16>
    tpu.vector_store %arg4[%c0_5, %c0_6], %8 {strides = array<i32>} : memref<256x128xbf16, #tpu.memory_space<vmem>>, vector<256x128xbf16>,
    return
  }
  func.func @transform_0(%arg0: i32, %arg1: i32) -> (i32, i32) {
    %c0_i32 = arith.constant 0 : i32
    %c0_i32_0 = arith.constant 0 : i32
    return %arg0, %c0_i32 : i32, i32
  }
  func.func @transform_1(%arg0: i32, %arg1: i32) -> (i32, i32) {
    %c0_i32 = arith.constant 0 : i32
    %c0_i32_0 = arith.constant 0 : i32
    return %c0_i32, %arg1 : i32, i32
  }
  func.func @transform_2(%arg0: i32, %arg1: i32) -> (i32, i32) {
    %c0_i32 = arith.constant 0 : i32
    return %arg0, %arg1 : i32, i32
  }
}

</mosaic_0001>

<bundles_post_ra>
// kernel: tpu_custom_call.1
= control target key start
LH: loop header
LB: loop body
LE: loop exit
PB: predicated region body
PF: predicated region fallthrough
CT: control target
= control target key end

     0   :  { %7 = vsyncpa [#allocation3], 0  ;;  %s1454_s0 = inlined_call_operand.hbm [shape: bf16[2048,128], index: 0, kind: input, shape index: {}]   ;;  %s1455_s1 = inlined_call_operand.hbm [shape: bf16[128,128], index: 1, kind: input, shape index: {}]   ;;  %s1456_s2 = inlined_call_operand.hbm [shape: bf16[2048,128], index: 2, kind: output, shape index: {}]  }
   0x1   :  { %9 = vsyncpa [#allocation3 + $0x1], 0 }
   0x2   :  { %10 = vsyncpa [#allocation6], 0 }
   0x3   :  { %11 = vsyncpa [#allocation4], 0 }
   0x4   :  { %13 = vsyncpa [#allocation4 + $0x1], 0  ;;  %s1260_s9 = smov 0   ;;  %s1262_s10 = smov 0  }
   0x5   :  { %s1264_s11 = smov 0   ;;  %s1266_s12 = smov 0  }
   0x6   :  { %s1268_s13 = smov 0   ;;  %s1270_s14 = smov 0  }
   0x7 LB: > { %s757_s15 = sadd.s32 4294967295, %s1238_s14   ;;  %s758_s16 = sadd.s32 4294967294, %s1238_s14   ;;  %s1238_s14 = sphi %s1270_s14, %s19_s14   ;;  %s1234_s13 = sphi %s1268_s13, %s1468_s13   ;;  %s1230_s12 = sphi %s1266_s12, %s1467_s12   ;;  %s1226_s11 = sphi %s1264_s11, %s1466_s11   ;;  %s1222_s10 = sphi %s1262_s10, %s1465_s10   ;;  %s1218_s9 = sphi %s1260_s9, %s1464_s9  }
   0x8   : > { %p51_p0 = scmp.ne.s32.totalorder %s1222_s10, %s1218_s9  ;;  %p1294_p1 = scmp.eq.s32.totalorder %s757_s15, 0 }
   0x9   : > { %p1298_p2 = scmp.eq.s32.totalorder %s757_s15, 7  ;;  %p109_p3 = scmp.eq.s32.totalorder %s758_s16, 7 }
   0xa   : > { %p1304_p4 = por %p1294_p1, %p51_p0  ;;  %p759_p5 = scmp.ge.s32.totalorder %s1238_s14, 1 }
   0xb   : > { %p1309_p6 = por %p109_p3, %p51_p0  ;;  %p116_p7 = scmp.lt.s32.totalorder %s1238_s14, 9 }
   0xc   : > { %s129_s23 = sshll.u32 %s1455_s1, 4  ;;  %s1240_s25 = smov [#allocation5]   ;;  %s130_s23 = int_to_ptr.hbm [resolvable:$true] %s129_s23 }
   0xd   : > { %p1317_p8 = pnand %p759_p5, %p116_p7  ;;  %s131_s26 = sshll.u32 %s1240_s25, 4  ;;  %s132_s26 = int_to_ptr.vmem [resolvable:$true] %s131_s26 }
   0xe   : > { %s1241_s27 = smov 64   ;;  %s1242_s28 = smov 4  }
   0xf   : > { %p1023_p9 = pneg %p1317_p8  ;;  %s31_s29 = sadd.s32 1, %s1234_s13 }
  0x10   : > { %p33_p11 = scmp.ge.s32.totalorder %s31_s29, 8  ;;  %s38_s30 = sadd.s32 1, %s1226_s11 }
  0x11   : > { %p1024_p10 = pnand %p1023_p9, %p1294_p1  ;;  %p45_p12 = scmp.ne.s32.totalorder %s1226_s11, %s1222_s10 }
  0x12   : > { %p46_p13 = scmp.eq.s32.totalorder %s1238_s14, 0  ;;  %s1470_s29 = smov (%p33_p11, %s31_s29), 0 }
  0x13   : > { %1026 = dma.hbm_to_vmem [thread:$0]  (!%p1024_p10), %s130_s23, 1024, %s132_s26, [#allocation6], %s1241_s27, %s1241_s27, %s1242_s28  }
  0x14   : > { %p1335_p0 = por %p46_p13, %p45_p12  ;;  %p1341_p3 = por %p1298_p2, %p45_p12 }
  0x15   : > { %s35_s5 = ssub.s32 %s1234_s13, %s1470_s29  ;;  %p1036_p5 = scmp.lt.s32.totalorder %s1238_s14, 8 }
  0x16   : > { %p36_p7 = scmp.eq.s32.totalorder %s35_s5, 0  ;;  %s145_s6 = sand.u32 1, %s1226_s11  }
  0x17   : > { %s762_s7 = sshll.u32 %s145_s6, 7  ;;  %s870_s15 = sshll.u32 %s1234_s13, 7 }
  0x18   : > { %s1350_s8 = scalar_select %p36_p7, %s1226_s11, %s38_s30  }
  0x19   : > { %s154_s22 = scalar_lea.hbm %s1454_s0, %s870_s15  ;;  %s149_s23 = scalar_lea.vmem [#allocation2], %s762_s7 }
  0x1a   : > { %s157_s25 = sshll.u32 %s149_s23, 4  ;;  %s155_s18 = sshll.u32 %s154_s22, 4  ;;  %s158_s25 = int_to_ptr.vmem [resolvable:$true] %s157_s25  ;;  %s156_s18 = int_to_ptr.hbm [resolvable:$true] %s155_s18 }
  0x1b   : > { %p1028_p2 = pnand %p1036_p5, %p1335_p0  ;;  %s146_s26 = scalar_lea.sflag [#allocation3], %s145_s6 }
  0x1c   : > { %169 = sbr.rel (%p1317_p8) target bundleno = 267 (0x10b), region = 28  ;;  %s1364_s30 = sand.u32 (!%p1317_p8), 1, %s1222_s10  }
  0x1d   : > { %1030 = dma.hbm_to_vmem [thread:$0]  (!%p1028_p2), %s156_s18, 2048, %s158_s25, %s146_s26, %s1241_s27, %s1241_s27, %s1242_s28  }
  0x1e   : > { %s766_s5 = sshll.u32 (!%p1317_p8), %s1364_s30, 7  ;;  %s172_s7 = scalar_lea.sflag (!%p1317_p8), [#allocation3], %s1364_s30 }
  0x1f   : > { %s1370_s3 = scalar_lea.vmem (!%p1317_p8), [#allocation2], %s766_s5 }
  0x21   : > { %1205 = dma.done.wait (%p1304_p4), %s172_s7, 2048  }
  0x22   : > { %1207 = vsyncadd (%p1304_p4), %s172_s7, 4294965248 }
  0x23   : > { %1209 = dma.done.wait (%p1294_p1), [#allocation6], 1024  }
  0x24   : > { %1211 = vsyncadd (%p1294_p1), [#allocation6], 4294966272  ;;  %v894_v0 = vld [vmem:[#allocation5 + $0x38] sm:$0xff]  ;;  %v893_v1 = vld [vmem:[#allocation5 + $0x30] sm:$0xff]  ;;  %s1398_s17 = scalar_lea.vmem [#allocation7], %s766_s5  ;;  %s895_s19 = sshll.u32 %s1230_s12, 7 }
  0x25   : > { %396 = vmatpush.bf16.msra.mxu0 %v894_v0  ;;  %991 = vmatpush.bf16.msra.mxu1 %v894_v0  ;;  %v892_v2 = vld [vmem:[#allocation5 + $0x28] sm:$0xff]  ;;  %v891_v3 = vld [vmem:[#allocation5 + $0x20] sm:$0xff]  ;;  %v890_v4 = vld [vmem:[#allocation5 + $0x18] sm:$0xff]  ;;  %s658_s28 = scalar_lea.hbm %s1456_s2, %s895_s19  ;;  %s659_s12 = sshll.u32 %s1398_s17, 4  ;;  %s660_s12 = int_to_ptr.vmem [resolvable:$true] %s659_s12 }
  0x26   : > { %992 = vmatpush.bf16.msra.mxu2 %v894_v0  ;;  %993 = vmatpush.bf16.msra.mxu3 %v894_v0  ;;  %v889_v5 = vld [vmem:[#allocation5 + $0x10] sm:$0xff]  ;;  %v888_v6 = vld [vmem:[#allocation5 + $0x8] sm:$0xff]  ;;  %v887_v7 = vld [vmem:[#allocation5] sm:$0xff]  ;;  %s661_s6 = sshll.u32 %s658_s28, 4  ;;  %s646_s15 = scalar_lea.sflag [#allocation4], %s1364_s30  ;;  %s662_s6 = int_to_ptr.hbm [resolvable:$true] %s661_s6 }
  0x27   : > { %v871_v8 = vld [vmem:[%s1370_s3] sm:$0xff]  ;;  %v872_v12 = vld [vmem:[%s1370_s3 + $0x8] sm:$0xff]  ;;  %v873_v16 = vld [vmem:[%s1370_s3 + $0x10] sm:$0xff]  ;;  %s1166_s16 = sshra.s32 %s662_s6, 4  ;;  %s1172_s25 = scalar_lea.hbm %s1456_s2, 1024  ;;  %s1167_s16 = int_to_ptr.hbm [resolvable:$true] %s1166_s16 }
  0x28   : > { %v875_v9 = vld [vmem:[%s1370_s3 + $0x20] sm:$0xff]  ;;  %v876_v13 = vld [vmem:[%s1370_s3 + $0x28] sm:$0xff]  ;;  %v877_v17 = vld [vmem:[%s1370_s3 + $0x30] sm:$0xff]  ;;  %s1168_s21 = scalar_lea.hbm %s1167_s16, 128  ;;  %p1173_p9 = scmp.lt.s32.totalorder %s1167_s16, %s1456_s2 }
  0x29   : > { %397 = vmatpush.bf16.msra.mxu0 %v893_v1  ;;  %994 = vmatpush.bf16.msra.mxu1 %v893_v1  ;;  %v879_v10 = vld [vmem:[%s1370_s3 + $0x40] sm:$0xff]  ;;  %v880_v14 = vld [vmem:[%s1370_s3 + $0x48] sm:$0xff]  ;;  %v881_v18 = vld [vmem:[%s1370_s3 + $0x50] sm:$0xff]  ;;  %p1169_p1 = scmp.ne.s32.totalorder %s1167_s16, %s1168_s21  ;;  %p1174_p10 = scmp.lt.s32.totalorder %s1172_s25, %s1168_s21 }
  0x2a   : > { %995 = vmatpush.bf16.msra.mxu2 %v893_v1  ;;  %996 = vmatpush.bf16.msra.mxu3 %v893_v1  ;;  %v883_v11 = vld [vmem:[%s1370_s3 + $0x60] sm:$0xff]  ;;  %v884_v15 = vld [vmem:[%s1370_s3 + $0x68] sm:$0xff]  ;;  %v885_v19 = vld [vmem:[%s1370_s3 + $0x70] sm:$0xff] }
  0x2b   : > { %v874_v20 = vld [vmem:[%s1370_s3 + $0x18] sm:$0xff]  ;;  %p1170_p4 = pnand %p1169_p1, %p1341_p3  ;;  %p1175_p11 = por %p1174_p10, %p1173_p9 }
  0x2c   : > { %v878_v21 = vld [vmem:[%s1370_s3 + $0x38] sm:$0xff] }
  0x2d   : > { %398 = vmatpush.bf16.msra.mxu0 %v892_v2  ;;  %997 = vmatpush.bf16.msra.mxu1 %v892_v2  ;;  %v882_v22 = vld [vmem:[%s1370_s3 + $0x58] sm:$0xff]  ;;  %p1171_p8 = pneg %p1170_p4 }
  0x2e   : > { %998 = vmatpush.bf16.msra.mxu2 %v892_v2  ;;  %999 = vmatpush.bf16.msra.mxu3 %v892_v2  ;;  %v886_v23 = vld [vmem:[%s1370_s3 + $0x78] sm:$0xff] }
  0x2f   : > { %p1176_p12 = pnand %p1175_p11, %p1171_p8 }
  0x31   : > { %399 = vmatpush.bf16.msra.mxu0 %v891_v3  ;;  %1000 = vmatpush.bf16.msra.mxu1 %v891_v3 }
  0x32   : > { %1001 = vmatpush.bf16.msra.mxu2 %v891_v3  ;;  %1002 = vmatpush.bf16.msra.mxu3 %v891_v3 }
  0x35   : > { %400 = vmatpush.bf16.msra.mxu0 %v890_v4  ;;  %1003 = vmatpush.bf16.msra.mxu1 %v890_v4 }
  0x36   : > { %1004 = vmatpush.bf16.msra.mxu2 %v890_v4  ;;  %1005 = vmatpush.bf16.msra.mxu3 %v890_v4 }
  0x39   : > { %401 = vmatpush.bf16.msra.mxu0 %v889_v5  ;;  %1006 = vmatpush.bf16.msra.mxu1 %v889_v5 }
  0x3a   : > { %1007 = vmatpush.bf16.msra.mxu2 %v889_v5  ;;  %1008 = vmatpush.bf16.msra.mxu3 %v889_v5 }
  0x3d   : > { %402 = vmatpush.bf16.msra.mxu0 %v888_v6  ;;  %1009 = vmatpush.bf16.msra.mxu1 %v888_v6 }
  0x3e   : > { %1010 = vmatpush.bf16.msra.mxu2 %v888_v6  ;;  %1011 = vmatpush.bf16.msra.mxu3 %v888_v6 }
  0x41   : > { %403 = vmatpush.bf16.msra.mxu0 %v887_v7  ;;  %1012 = vmatpush.bf16.msra.mxu1 %v887_v7 }
  0x42   : > { %1013 = vmatpush.bf16.msra.mxu2 %v887_v7  ;;  %1014 = vmatpush.bf16.msra.mxu3 %v887_v7 }
  0x44   : > { %404 = vmatmul.bf16.vlgmr.msra.gmra.mxu0 %v871_v8  ;;  %424 = vmatmul.bf16.vlgmr.msra.gmra.mxu1 %v875_v9 }
  0x45   : > { %444 = vmatmul.bf16.vlgmr.msra.gmra.mxu2 %v879_v10  ;;  %464 = vmatmul.bf16.vlgmr.msra.gmra.mxu3 %v883_v11 }
  0x54   : > { %409 = vmatmul.bf16.gmra.mxu0 %v872_v12  ;;  %429 = vmatmul.bf16.gmra.mxu1 %v876_v13 }
  0x55   : > { %449 = vmatmul.bf16.gmra.mxu2 %v880_v14  ;;  %469 = vmatmul.bf16.gmra.mxu3 %v884_v15 }
  0x64   : > { %414 = vmatmul.bf16.gmra.mxu0 %v873_v16  ;;  %434 = vmatmul.bf16.gmra.mxu1 %v877_v17 }
  0x65   : > { %454 = vmatmul.bf16.gmra.mxu2 %v881_v18  ;;  %474 = vmatmul.bf16.gmra.mxu3 %v885_v19 }
  0x74   : > { %419 = vmatmul.bf16.gmra.mxu0 %v874_v20  ;;  %439 = vmatmul.bf16.gmra.mxu1 %v878_v21 }
  0x75   : > { %459 = vmatmul.bf16.gmra.mxu2 %v882_v22  ;;  %479 = vmatmul.bf16.gmra.mxu3 %v886_v23 }
  0xc1   : > { %v405_v24 = vpop.f32.mrf.mxu0  ;;  %v425_v25 = vpop.f32.mrf.mxu1 }
  0xc2   : > { %v517_v26 = vmul.f32 0.2, %v405_v24  ;;  %v525_v27 = vmul.f32 0.2, %v425_v25  ;;  %vm485_vm0 = vcmp.ge.f32.partialorder %v405_v24, 0.0  ;;  %vm493_vm1 = vcmp.ge.f32.partialorder %v425_v25, 0.0 }
  0xc4   : > { %v549_v34 = vsel %vm485_vm0, %v405_v24, %v517_v26  ;;  %v557_v35 = vsel %vm493_vm1, %v425_v25, %v525_v27 }
  0xc8   : > { %v445_v28 = vpop.f32.mrf.mxu2  ;;  %v465_v29 = vpop.f32.mrf.mxu3 }
  0xc9   : > { %v407_v30 = vpop.f32.mrf.mxu0  ;;  %v427_v31 = vpop.f32.mrf.mxu1  ;;  %v533_v40 = vmul.f32 0.2, %v445_v28  ;;  %v541_v41 = vmul.f32 0.2, %v465_v29  ;;  %vm501_vm4 = vcmp.ge.f32.partialorder %v445_v28, 0.0  ;;  %vm509_vm5 = vcmp.ge.f32.partialorder %v465_v29, 0.0 }
  0xca   : > { %vm486_vm2 = vcmp.ge.f32.partialorder %v407_v30, 0.0  ;;  %v518_v32 = vmul.f32 0.2, %v407_v30  ;;  %vm494_vm3 = vcmp.ge.f32.partialorder %v427_v31, 0.0  ;;  %v526_v33 = vmul.f32 0.2, %v427_v31 }
  0xcb   : > { %v565_v48 = vsel %vm501_vm4, %v445_v28, %v533_v40  ;;  %v573_v49 = vsel %vm509_vm5, %v465_v29, %v541_v41 }
  0xcc   : > { %v550_v36 = vsel %vm486_vm2, %v407_v30, %v518_v32  ;;  %v558_v37 = vsel %vm494_vm3, %v427_v31, %v526_v33 }
  0xcd   : > { %v899_v38 = vpack.c.bf16 %v550_v36, %v549_v34  ;;  %v919_v39 = vpack.c.bf16 %v558_v37, %v557_v35 }
  0xcf   : > { %900 = vst [vmem:[%s1398_s17] sm:$0xff] %v899_v38  }
  0xd0   : > { %979 = vst [vmem:[%s1398_s17 + $0x20] sm:$0xff] %v919_v39   ;;  %v447_v42 = vpop.f32.mrf.mxu2  ;;  %v467_v43 = vpop.f32.mrf.mxu3 }
  0xd1   : > { %vm502_vm6 = vcmp.ge.f32.partialorder %v447_v42, 0.0  ;;  %v534_v44 = vmul.f32 0.2, %v447_v42  ;;  %vm510_vm7 = vcmp.ge.f32.partialorder %v467_v43, 0.0  ;;  %v542_v45 = vmul.f32 0.2, %v467_v43  ;;  %v410_v46 = vpop.f32.mrf.mxu0  ;;  %v430_v47 = vpop.f32.mrf.mxu1 }
  0xd2   : > { %v519_v54 = vmul.f32 0.2, %v410_v46  ;;  %v527_v55 = vmul.f32 0.2, %v430_v47  ;;  %vm487_vm8 = vcmp.ge.f32.partialorder %v410_v46, 0.0  ;;  %vm495_vm9 = vcmp.ge.f32.partialorder %v430_v47, 0.0 }
  0xd3   : > { %v566_v50 = vsel %vm502_vm6, %v447_v42, %v534_v44  ;;  %v574_v51 = vsel %vm510_vm7, %v467_v43, %v542_v45 }
  0xd4   : > { %v939_v52 = vpack.c.bf16 %v566_v50, %v565_v48  ;;  %v959_v53 = vpack.c.bf16 %v574_v51, %v573_v49  ;;  %v551_v62 = vsel %vm487_vm8, %v410_v46, %v519_v54  ;;  %v559_v63 = vsel %vm495_vm9, %v430_v47, %v527_v55 }
  0xd6   : > { %983 = vst [vmem:[%s1398_s17 + $0x40] sm:$0xff] %v939_v52  }
  0xd7   : > { %987 = vst [vmem:[%s1398_s17 + $0x60] sm:$0xff] %v959_v53  }
  0xd8   : > { %v450_v56 = vpop.f32.mrf.mxu2  ;;  %v470_v57 = vpop.f32.mrf.mxu3 }
  0xd9   : > { %v412_v58 = vpop.f32.mrf.mxu0  ;;  %v432_v59 = vpop.f32.mrf.mxu1  ;;  %v535_v4 = vmul.f32 0.2, %v450_v56  ;;  %v543_v5 = vmul.f32 0.2, %v470_v57  ;;  %vm503_vm12 = vcmp.ge.f32.partialorder %v450_v56, 0.0  ;;  %vm511_vm13 = vcmp.ge.f32.partialorder %v470_v57, 0.0 }
  0xda   : > { %vm488_vm10 = vcmp.ge.f32.partialorder %v412_v58, 0.0  ;;  %v520_v60 = vmul.f32 0.2, %v412_v58  ;;  %vm496_vm11 = vcmp.ge.f32.partialorder %v432_v59, 0.0  ;;  %v528_v61 = vmul.f32 0.2, %v432_v59 }
  0xdb   : > { %v567_v12 = vsel %vm503_vm12, %v450_v56, %v535_v4  ;;  %v575_v13 = vsel %vm511_vm13, %v470_v57, %v543_v5 }
  0xdc   : > { %v552_v0 = vsel %vm488_vm10, %v412_v58, %v520_v60  ;;  %v560_v1 = vsel %vm496_vm11, %v432_v59, %v528_v61 }
  0xdd   : > { %v904_v2 = vpack.c.bf16 %v552_v0, %v551_v62  ;;  %v924_v3 = vpack.c.bf16 %v560_v1, %v559_v63 }
  0xdf   : > { %976 = vst [vmem:[%s1398_s17 + $0x8] sm:$0xff] %v904_v2  }
  0xe0   : > { %980 = vst [vmem:[%s1398_s17 + $0x28] sm:$0xff] %v924_v3   ;;  %v452_v6 = vpop.f32.mrf.mxu2  ;;  %v472_v7 = vpop.f32.mrf.mxu3 }
  0xe1   : > { %vm504_vm14 = vcmp.ge.f32.partialorder %v452_v6, 0.0  ;;  %v536_v8 = vmul.f32 0.2, %v452_v6  ;;  %vm512_vm15 = vcmp.ge.f32.partialorder %v472_v7, 0.0  ;;  %v544_v9 = vmul.f32 0.2, %v472_v7  ;;  %v415_v10 = vpop.f32.mrf.mxu0  ;;  %v435_v11 = vpop.f32.mrf.mxu1 }
  0xe2   : > { %v521_v18 = vmul.f32 0.2, %v415_v10  ;;  %v529_v19 = vmul.f32 0.2, %v435_v11  ;;  %vm489_vm0 = vcmp.ge.f32.partialorder %v415_v10, 0.0  ;;  %vm497_vm1 = vcmp.ge.f32.partialorder %v435_v11, 0.0 }
  0xe3   : > { %v568_v14 = vsel %vm504_vm14, %v452_v6, %v536_v8  ;;  %v576_v15 = vsel %vm512_vm15, %v472_v7, %v544_v9 }
  0xe4   : > { %v944_v16 = vpack.c.bf16 %v568_v14, %v567_v12  ;;  %v964_v17 = vpack.c.bf16 %v576_v15, %v575_v13  ;;  %v553_v26 = vsel %vm489_vm0, %v415_v10, %v521_v18  ;;  %v561_v27 = vsel %vm497_vm1, %v435_v11, %v529_v19 }
  0xe6   : > { %984 = vst [vmem:[%s1398_s17 + $0x48] sm:$0xff] %v944_v16  }
  0xe7   : > { %988 = vst [vmem:[%s1398_s17 + $0x68] sm:$0xff] %v964_v17  }
  0xe8   : > { %v455_v20 = vpop.f32.mrf.mxu2  ;;  %v475_v21 = vpop.f32.mrf.mxu3 }
  0xe9   : > { %v417_v22 = vpop.f32.mrf.mxu0  ;;  %v437_v23 = vpop.f32.mrf.mxu1  ;;  %v537_v32 = vmul.f32 0.2, %v455_v20  ;;  %v545_v33 = vmul.f32 0.2, %v475_v21  ;;  %vm505_vm4 = vcmp.ge.f32.partialorder %v455_v20, 0.0  ;;  %vm513_vm5 = vcmp.ge.f32.partialorder %v475_v21, 0.0 }
  0xea   : > { %vm490_vm2 = vcmp.ge.f32.partialorder %v417_v22, 0.0  ;;  %v522_v24 = vmul.f32 0.2, %v417_v22  ;;  %vm498_vm3 = vcmp.ge.f32.partialorder %v437_v23, 0.0  ;;  %v530_v25 = vmul.f32 0.2, %v437_v23 }
  0xeb   : > { %v569_v40 = vsel %vm505_vm4, %v455_v20, %v537_v32  ;;  %v577_v41 = vsel %vm513_vm5, %v475_v21, %v545_v33 }
  0xec   : > { %v554_v28 = vsel %vm490_vm2, %v417_v22, %v522_v24  ;;  %v562_v29 = vsel %vm498_vm3, %v437_v23, %v530_v25 }
  0xed   : > { %v909_v30 = vpack.c.bf16 %v554_v28, %v553_v26  ;;  %v929_v31 = vpack.c.bf16 %v562_v29, %v561_v27 }
  0xef   : > { %977 = vst [vmem:[%s1398_s17 + $0x10] sm:$0xff] %v909_v30  }
  0xf0   : > { %981 = vst [vmem:[%s1398_s17 + $0x30] sm:$0xff] %v929_v31   ;;  %v457_v34 = vpop.f32.mrf.mxu2  ;;  %v477_v35 = vpop.f32.mrf.mxu3 }
  0xf1   : > { %vm506_vm6 = vcmp.ge.f32.partialorder %v457_v34, 0.0  ;;  %v538_v36 = vmul.f32 0.2, %v457_v34  ;;  %vm514_vm7 = vcmp.ge.f32.partialorder %v477_v35, 0.0  ;;  %v546_v37 = vmul.f32 0.2, %v477_v35  ;;  %v420_v38 = vpop.f32.mrf.mxu0  ;;  %v440_v39 = vpop.f32.mrf.mxu1 }
  0xf2   : > { %v523_v46 = vmul.f32 0.2, %v420_v38  ;;  %v531_v47 = vmul.f32 0.2, %v440_v39  ;;  %vm491_vm8 = vcmp.ge.f32.partialorder %v420_v38, 0.0  ;;  %vm499_vm9 = vcmp.ge.f32.partialorder %v440_v39, 0.0 }
  0xf3   : > { %v570_v42 = vsel %vm506_vm6, %v457_v34, %v538_v36  ;;  %v578_v43 = vsel %vm514_vm7, %v477_v35, %v546_v37 }
  0xf4   : > { %v949_v44 = vpack.c.bf16 %v570_v42, %v569_v40  ;;  %v969_v45 = vpack.c.bf16 %v578_v43, %v577_v41  ;;  %v555_v54 = vsel %vm491_vm8, %v420_v38, %v523_v46  ;;  %v563_v55 = vsel %vm499_vm9, %v440_v39, %v531_v47 }
  0xf6   : > { %985 = vst [vmem:[%s1398_s17 + $0x50] sm:$0xff] %v949_v44  }
  0xf7   : > { %989 = vst [vmem:[%s1398_s17 + $0x70] sm:$0xff] %v969_v45  }
  0xf8   : > { %v460_v48 = vpop.f32.mrf.mxu2  ;;  %v480_v49 = vpop.f32.mrf.mxu3 }
  0xf9   : > { %v422_v50 = vpop.f32.mrf.mxu0  ;;  %v442_v51 = vpop.f32.mrf.mxu1  ;;  %v539_v60 = vmul.f32 0.2, %v460_v48  ;;  %v547_v61 = vmul.f32 0.2, %v480_v49  ;;  %vm507_vm12 = vcmp.ge.f32.partialorder %v460_v48, 0.0  ;;  %vm515_vm13 = vcmp.ge.f32.partialorder %v480_v49, 0.0 }
  0xfa   : > { %vm492_vm10 = vcmp.ge.f32.partialorder %v422_v50, 0.0  ;;  %v524_v52 = vmul.f32 0.2, %v422_v50  ;;  %vm500_vm11 = vcmp.ge.f32.partialorder %v442_v51, 0.0  ;;  %v532_v53 = vmul.f32 0.2, %v442_v51 }
  0xfb   : > { %v571_v2 = vsel %vm507_vm12, %v460_v48, %v539_v60  ;;  %v579_v3 = vsel %vm515_vm13, %v480_v49, %v547_v61 }
  0xfc   : > { %v556_v56 = vsel %vm492_vm10, %v422_v50, %v524_v52  ;;  %v564_v57 = vsel %vm500_vm11, %v442_v51, %v532_v53 }
  0xfd   : > { %v914_v58 = vpack.c.bf16 %v556_v56, %v555_v54  ;;  %v934_v59 = vpack.c.bf16 %v564_v57, %v563_v55 }
  0xff   : > { %978 = vst [vmem:[%s1398_s17 + $0x18] sm:$0xff] %v914_v58  }
 0x100   : > { %982 = vst [vmem:[%s1398_s17 + $0x38] sm:$0xff] %v934_v59   ;;  %v462_v62 = vpop.f32.mrf.mxu2  ;;  %v482_v63 = vpop.f32.mrf.mxu3 }
 0x101   : > { %vm508_vm14 = vcmp.ge.f32.partialorder %v462_v62, 0.0  ;;  %v540_v0 = vmul.f32 0.2, %v462_v62  ;;  %vm516_vm15 = vcmp.ge.f32.partialorder %v482_v63, 0.0  ;;  %v548_v1 = vmul.f32 0.2, %v482_v63 }
 0x103   : > { %v572_v4 = vsel %vm508_vm14, %v462_v62, %v540_v0  ;;  %v580_v5 = vsel %vm516_vm15, %v482_v63, %v548_v1 }
 0x104   : > { %v954_v6 = vpack.c.bf16 %v572_v4, %v571_v2  ;;  %v974_v7 = vpack.c.bf16 %v580_v5, %v579_v3 }
 0x106   : > { %986 = vst [vmem:[%s1398_s17 + $0x58] sm:$0xff] %v954_v6  }
 0x107   : > { %990 = vst [vmem:[%s1398_s17 + $0x78] sm:$0xff] %v974_v7  }
 0x108   : > { %1179 = shalt.err (!%p1176_p12)
}
 0x109   : > { %s1243_s30 = smov 64   ;;  %s1244_s5 = smov 4  }
 0x10a   : > { %1021 = dma.vmem_to_hbm [thread:$0]  (%p1341_p3), %s660_s12, 2048, %s662_s6, %s646_s15, %s1243_s30, %s1243_s30, %s1244_s5  }
 0x10b PF: > { %p1038_p13 = scmp.ge.s32.totalorder %s1238_s14, 2  ;;  %s676_s7 = sand.u32 1, %s1218_s9  }
 0x10c   : > { %s677_s3 = scalar_lea.sflag [#allocation4], %s676_s7 }
 0x10d   : > { %p1032_p0 = pnand %p1038_p13, %p1309_p6 }
 0x10f   : > { %p1033_p5 = pneg %p1032_p0 }
 0x111   : > { %1213 = dma.done.wait (%p1033_p5), %s677_s3, 2048  }
 0x112   : > { %1215 = vsyncadd (%p1033_p5), %s677_s3, 4294965248  ;;  %s19_s14 = sadd.s32 1, %s1238_s14   ;;  %s1464_s9 = smov %s1222_s10 }
 0x113   : > { %p16_p7 = scmp.ge.s32.totalorder %s19_s14, 10   ;;  %s1465_s10 = smov %s1226_s11 }
 0x114   : > { %s1466_s11 = smov %s1350_s8  ;;  %s1467_s12 = smov %s1234_s13 }
 0x115   : > { %s1468_s13 = smov %s1470_s29  ;;  %18 = sbr.rel (!%p16_p7) target bundleno = 7 (0x7), region = 78 }
 0x11a   :  { %683 = vsyncpa [#allocation3], 1 }
 0x11b   :  { %685 = vsyncpa [#allocation3 + $0x1], 1 }
 0x11c   :  { %686 = vsyncpa [#allocation6], 1 }
 0x11d   :  { %687 = vsyncpa [#allocation4], 1 }
 0x11e   :  { %689 = vsyncpa [#allocation4 + $0x1], 1 }

</bundles_post_ra>
